<compile_context>
chip_gen: v5e
topology: v5e:2x2
jax: 0.10.0
libtpu: 0.0.40
codegen_flags: <defaults>
</compile_context>

<pallas_src>
import jax
import jax.numpy as jnp
from jax.experimental import pallas as pl
from jax.experimental.pallas import tpu as pltpu


def _round_up(x, m):
    return (x + m - 1) // m * m


def _nbytes(a):
    return a.size * a.dtype.itemsize


def _supcon_encode_kernel(ids_ref, tbl_ref, w1_ref, b1_ref, w2_ref, b2_ref, out_ref):
    # ids_ref: (TB, S)    int32 token ids for this batch tile
    # tbl_ref: (Vp, Hp)   bf16 embedding table (VMEM resident, constant index_map)
    # w1_ref : (Hp, D1p)  bf16, b1_ref: (1, D1p) f32
    # w2_ref : (D1p, D2p) bf16, b2_ref: (1, D2p) f32
    # out_ref: (TB, D2p)  f32 L2-normalized embedding (padded lanes are exactly 0)
    tb, s_len = ids_ref.shape
    vp = tbl_ref.shape[0]

    # Fused gather + mean pool: build a token-count matrix (TB, Vp) on the VPU, then
    # one MXU matmul against the bf16 table.  counts @ table == sum_s table[ids[:, s]].
    # fori_loop (bounded live ranges) with modest unroll; counts stay f32 (exact for
    # any S, and v5e has no bf16 VALU) and are cast to bf16 only at the MXU boundary.
    lane_iota = jax.lax.broadcasted_iota(jnp.int32, (tb, vp), 1)

    def count_body(s, counts):
        col = ids_ref[:, pl.ds(s, 1)]                         # (TB, 1) int32
        return counts + (col == lane_iota).astype(jnp.float32)

    counts = jax.lax.fori_loop(
        0, s_len, count_body, jnp.zeros((tb, vp), jnp.float32),
        unroll=min(8, s_len))

    pooled = jnp.dot(counts.astype(jnp.bfloat16), tbl_ref[...],
                     preferred_element_type=jnp.float32) * (1.0 / s_len)   # (TB, Hp) f32

    # Projection head: Linear -> ReLU -> Linear.  bf16 operands, f32 MXU accumulation.
    h = jnp.dot(pooled.astype(jnp.bfloat16), w1_ref[...],
                preferred_element_type=jnp.float32) + b1_ref[...]
    h = jnp.maximum(h, 0.0)                                   # (TB, D1p) f32
    z = jnp.dot(h.astype(jnp.bfloat16), w2_ref[...],
                preferred_element_type=jnp.float32) + b2_ref[...]

    # L2 normalize (F.normalize, eps=1e-12): z / max(||z||, eps) == z * rsqrt(max(||z||^2, eps^2))
    sumsq = jnp.sum(z * z, axis=-1, keepdims=True)
    inv = jax.lax.rsqrt(jnp.maximum(sumsq, 1e-24))
    out_ref[...] = z * inv


def prepare_supcon_params(emb_table, w1, b1, w2, b2):
    """One-time prep: lane-dense zero-padding + bf16 cast of table and weights.

    Padded lanes/rows are exactly zero, so bias/ReLU/L2-norm are unchanged.  Doing
    this once removes a full padded copy of the table from the steady-state path.
    """
    V, H = emb_table.shape
    D1 = w1.shape[1]
    D2 = w2.shape[1]
    Vp, Hp, D1p, D2p = (_round_up(d, 128) for d in (V, H, D1, D2))

    tbl_p = jnp.zeros((Vp, Hp), jnp.bfloat16).at[:V, :H].set(emb_table.astype(jnp.bfloat16))
    w1_p = jnp.zeros((Hp, D1p), jnp.bfloat16).at[:H, :D1].set(w1.astype(jnp.bfloat16))
    b1_p = jnp.zeros((1, D1p), jnp.float32).at[0, :D1].set(b1.astype(jnp.float32))
    w2_p = jnp.zeros((D1p, D2p), jnp.bfloat16).at[:D1, :D2].set(w2.astype(jnp.bfloat16))
    b2_p = jnp.zeros((1, D2p), jnp.float32).at[0, :D2].set(b2.astype(jnp.float32))
    return {"tbl": tbl_p, "w1": w1_p, "b1": b1_p, "w2": w2_p, "b2": b2_p, "out_dim": D2}


def supcon_encode(token_ids, params, *, tile_b=None):
    """texts (token ids, int32 [B, S]) -> L2-normalized embeddings [B, D2].

    tile_b: batch tile per grid step.  Default picks a large lane/sublane-aligned
    tile (up to 128).  Production guidance: 128 on v5e, up to 256 on v6e, roughly
    half that on v7x (64 MiB VMEM per TensorCore) and keep >=2 grid steps so both
    v7x TensorCores get work.
    """
    B, S = token_ids.shape
    tbl, w1, b1, w2, b2 = (params[k] for k in ("tbl", "w1", "b1", "w2", "b2"))
    Vp, Hp = tbl.shape
    D1p = w1.shape[1]
    D2p = w2.shape[1]
    D2 = params["out_dim"]

    if tile_b is None:
        tile_b = min(128, max(8, _round_up(B, 8)))
    tile_b = _round_up(tile_b, 8)                              # sublane alignment
    Bp = _round_up(B, tile_b)
    ids_p = jnp.zeros((Bp, S), jnp.int32).at[:B].set(token_ids.astype(jnp.int32))
    grid = (pl.cdiv(Bp, tile_b),)

    # VMEM budget: resident operands (double-buffered by default) + per-tile traffic
    # + in-kernel intermediates.  Clamped to 64 MiB so it is valid on v7x too.
    resident = _nbytes(tbl) + _nbytes(w1) + _nbytes(w2) + _nbytes(b1) + _nbytes(b2)
    per_tile = tile_b * (S * 4 + D2p * 4)                       # ids tile + out tile
    intermed = tile_b * (Vp * 6 + Hp * 6 + D1p * 6 + D2p * 4)   # counts/pooled/h/z (+bf16 copies)
    need = 2 * (resident + per_tile) + intermed
    vmem_limit = int(min(max(need, 32 << 20), 64 << 20))

    cost = pl.CostEstimate(
        flops=2 * Bp * (Vp * Hp + Hp * D1p + D1p * D2p),
        transcendentals=Bp,                                     # one rsqrt per row
        bytes_accessed=resident + _nbytes(ids_p) + Bp * D2p * 4,
    )

    out_padded = pl.pallas_call(
        _supcon_encode_kernel,
        out_shape=jax.ShapeDtypeStruct((Bp, D2p), jnp.float32),
        grid=grid,
        in_specs=[
            pl.BlockSpec((tile_b, S), lambda i: (i, 0)),        # token ids: per-tile
            pl.BlockSpec((Vp, Hp), lambda i: (0, 0)),            # table: VMEM resident
            pl.BlockSpec((Hp, D1p), lambda i: (0, 0)),           # w1: resident
            pl.BlockSpec((1, D1p), lambda i: (0, 0)),            # b1: resident
            pl.BlockSpec((D1p, D2p), lambda i: (0, 0)),          # w2: resident
            pl.BlockSpec((1, D2p), lambda i: (0, 0)),            # b2: resident
        ],
        out_specs=pl.BlockSpec((tile_b, D2p), lambda i: (i, 0)),
        compiler_params=pltpu.CompilerParams(
            dimension_semantics=("parallel",),                   # megacore on v7x
            vmem_limit_bytes=vmem_limit,
        ),
        cost_estimate=cost,
    )(ids_p, tbl, w1, b1, w2, b2)

    return out_padded[:B, :D2]


if __name__ == "__main__":
    # Small synthetic shapes consistent with a siamese text encoder.
    B, S, H, D1, D2, VOCAB = 20, 8, 32, 64, 32, 64

    key = jax.random.PRNGKey(0)
    k_tok, k_emb, k_w1, k_b1, k_w2, k_b2 = jax.random.split(key, 6)

    token_ids = jax.random.randint(k_tok, (B, S), 0, VOCAB, dtype=jnp.int32)
    emb_table = jax.random.normal(k_emb, (VOCAB, H), dtype=jnp.float32) * 0.1
    w1 = jax.random.normal(k_w1, (H, D1), dtype=jnp.float32) * 0.1
    b1 = jax.random.normal(k_b1, (D1,), dtype=jnp.float32) * 0.01
    w2 = jax.random.normal(k_w2, (D1, D2), dtype=jnp.float32) * 0.1
    b2 = jax.random.normal(k_b2, (D2,), dtype=jnp.float32) * 0.01

    params = prepare_supcon_params(emb_table, w1, b1, w2, b2)   # one-time prep
    # tile_b=8 only because B=20 here; default picks up to 128 for real batches.
    out = supcon_encode(token_ids, params, tile_b=8)
    out = jax.block_until_ready(out)

    # Reference (same math, with the kernel's bf16 rounding of table/weights/activations).
    tbl_f32 = emb_table.astype(jnp.bfloat16).astype(jnp.float32)
    w1_f = w1.astype(jnp.bfloat16).astype(jnp.float32)
    w2_f = w2.astype(jnp.bfloat16).astype(jnp.float32)
    emb = jnp.take(tbl_f32, token_ids, axis=0)                  # (B, S, H)
    pooled = jnp.mean(emb, axis=1)                              # (B, H)
    h = jnp.maximum(pooled.astype(jnp.bfloat16).astype(jnp.float32) @ w1_f + b1, 0.0)
    z = h.astype(jnp.bfloat16).astype(jnp.float32) @ w2_f + b2
    ref = z / jnp.maximum(jnp.linalg.norm(z, axis=-1, keepdims=True), 1e-12)

    assert out.shape == (B, D2)
    err = float(jnp.max(jnp.abs(out - ref)))
    assert jnp.allclose(out, ref, atol=5e-3, rtol=5e-3), err

    print("KERNEL_OK")
</pallas_src>

<mosaic_0001>
module attributes {stable_mosaic.version = 11 : i64} {
  func.func @_supcon_encode_kernel(%arg0: i32, %arg1: memref<8x8xi32, #tpu.memory_space<vmem>>, %arg2: memref<128x128xbf16, #tpu.memory_space<vmem>>, %arg3: memref<128x128xbf16, #tpu.memory_space<vmem>>, %arg4: memref<1x128xf32, #tpu.memory_space<vmem>>, %arg5: memref<128x128xbf16, #tpu.memory_space<vmem>>, %arg6: memref<1x128xf32, #tpu.memory_space<vmem>>, %arg7: memref<8x128xf32, #tpu.memory_space<vmem>>) attributes {dimension_semantics = [#tpu.dimension_semantics<parallel>], iteration_bounds = array<i64: 3>, scalar_prefetch = 0 : i64, scratch_operands = 0 : i64, tpu.core_type = #tpu.core_type<tc>, window_params = [{transform_indices = @transform_0, window_bounds = array<i64: 8, 8>}, {pipeline_mode = #tpu.pipeline_mode<synchronous>, transform_indices = @transform_1, window_bounds = array<i64: 128, 128>}, {pipeline_mode = #tpu.pipeline_mode<synchronous>, transform_indices = @transform_2, window_bounds = array<i64: 128, 128>}, {pipeline_mode = #tpu.pipeline_mode<synchronous>, transform_indices = @transform_3, window_bounds = array<i64: 1, 128>}, {pipeline_mode = #tpu.pipeline_mode<synchronous>, transform_indices = @transform_4, window_bounds = array<i64: 128, 128>}, {pipeline_mode = #tpu.pipeline_mode<synchronous>, transform_indices = @transform_5, window_bounds = array<i64: 1, 128>}, {transform_indices = @transform_6, window_bounds = array<i64: 8, 128>}]} {
    %0 = tpu.iota {dimensions = array<i32: 1>} : vector<8x128xi32>
    %cst = arith.constant 0.000000e+00 : f32
    %1 = vector.broadcast %cst : f32 to vector<8x128xf32>
    %c0_i32 = arith.constant 0 : i32
    %c0 = arith.constant 0 : index
    %2 = arith.index_cast %c0_i32 : i32 to index
    %3 = vector.load %arg1[%c0, %2] : memref<8x8xi32, #tpu.memory_space<vmem>>, vector<8x1xi32>
    %4 = vector.broadcast %3 : vector<8x1xi32> to vector<8x128xi32>
    %5 = arith.cmpi eq, %4, %0 : vector<8x128xi32>
    %6 = arith.extui %5 : vector<8x128xi1> to vector<8x128xi32>
    %7 = arith.sitofp %6 : vector<8x128xi32> to vector<8x128xf32>
    %8 = arith.addf %1, %7 : vector<8x128xf32>
    %c1_i32 = arith.constant 1 : i32
    %c0_0 = arith.constant 0 : index
    %9 = arith.index_cast %c1_i32 : i32 to index
    %10 = vector.load %arg1[%c0_0, %9] : memref<8x8xi32, #tpu.memory_space<vmem>>, vector<8x1xi32>
    %11 = vector.broadcast %10 : vector<8x1xi32> to vector<8x128xi32>
    %12 = arith.cmpi eq, %11, %0 : vector<8x128xi32>
    %13 = arith.extui %12 : vector<8x128xi1> to vector<8x128xi32>
    %14 = arith.sitofp %13 : vector<8x128xi32> to vector<8x128xf32>
    %15 = arith.addf %8, %14 : vector<8x128xf32>
    %c2_i32 = arith.constant 2 : i32
    %c0_1 = arith.constant 0 : index
    %16 = arith.index_cast %c2_i32 : i32 to index
    %17 = vector.load %arg1[%c0_1, %16] : memref<8x8xi32, #tpu.memory_space<vmem>>, vector<8x1xi32>
    %18 = vector.broadcast %17 : vector<8x1xi32> to vector<8x128xi32>
    %19 = arith.cmpi eq, %18, %0 : vector<8x128xi32>
    %20 = arith.extui %19 : vector<8x128xi1> to vector<8x128xi32>
    %21 = arith.sitofp %20 : vector<8x128xi32> to vector<8x128xf32>
    %22 = arith.addf %15, %21 : vector<8x128xf32>
    %c3_i32 = arith.constant 3 : i32
    %c0_2 = arith.constant 0 : index
    %23 = arith.index_cast %c3_i32 : i32 to index
    %24 = vector.load %arg1[%c0_2, %23] : memref<8x8xi32, #tpu.memory_space<vmem>>, vector<8x1xi32>
    %25 = vector.broadcast %24 : vector<8x1xi32> to vector<8x128xi32>
    %26 = arith.cmpi eq, %25, %0 : vector<8x128xi32>
    %27 = arith.extui %26 : vector<8x128xi1> to vector<8x128xi32>
    %28 = arith.sitofp %27 : vector<8x128xi32> to vector<8x128xf32>
    %29 = arith.addf %22, %28 : vector<8x128xf32>
    %c4_i32 = arith.constant 4 : i32
    %c0_3 = arith.constant 0 : index
    %30 = arith.index_cast %c4_i32 : i32 to index
    %31 = vector.load %arg1[%c0_3, %30] : memref<8x8xi32, #tpu.memory_space<vmem>>, vector<8x1xi32>
    %32 = vector.broadcast %31 : vector<8x1xi32> to vector<8x128xi32>
    %33 = arith.cmpi eq, %32, %0 : vector<8x128xi32>
    %34 = arith.extui %33 : vector<8x128xi1> to vector<8x128xi32>
    %35 = arith.sitofp %34 : vector<8x128xi32> to vector<8x128xf32>
    %36 = arith.addf %29, %35 : vector<8x128xf32>
    %c5_i32 = arith.constant 5 : i32
    %c0_4 = arith.constant 0 : index
    %37 = arith.index_cast %c5_i32 : i32 to index
    %38 = vector.load %arg1[%c0_4, %37] : memref<8x8xi32, #tpu.memory_space<vmem>>, vector<8x1xi32>
    %39 = vector.broadcast %38 : vector<8x1xi32> to vector<8x128xi32>
    %40 = arith.cmpi eq, %39, %0 : vector<8x128xi32>
    %41 = arith.extui %40 : vector<8x128xi1> to vector<8x128xi32>
    %42 = arith.sitofp %41 : vector<8x128xi32> to vector<8x128xf32>
    %43 = arith.addf %36, %42 : vector<8x128xf32>
    %c6_i32 = arith.constant 6 : i32
    %c0_5 = arith.constant 0 : index
    %44 = arith.index_cast %c6_i32 : i32 to index
    %45 = vector.load %arg1[%c0_5, %44] : memref<8x8xi32, #tpu.memory_space<vmem>>, vector<8x1xi32>
    %46 = vector.broadcast %45 : vector<8x1xi32> to vector<8x128xi32>
    %47 = arith.cmpi eq, %46, %0 : vector<8x128xi32>
    %48 = arith.extui %47 : vector<8x128xi1> to vector<8x128xi32>
    %49 = arith.sitofp %48 : vector<8x128xi32> to vector<8x128xf32>
    %50 = arith.addf %43, %49 : vector<8x128xf32>
    %c7_i32 = arith.constant 7 : i32
    %c0_6 = arith.constant 0 : index
    %51 = arith.index_cast %c7_i32 : i32 to index
    %52 = vector.load %arg1[%c0_6, %51] : memref<8x8xi32, #tpu.memory_space<vmem>>, vector<8x1xi32>
    %53 = vector.broadcast %52 : vector<8x1xi32> to vector<8x128xi32>
    %54 = arith.cmpi eq, %53, %0 : vector<8x128xi32>
    %55 = arith.extui %54 : vector<8x128xi1> to vector<8x128xi32>
    %56 = arith.sitofp %55 : vector<8x128xi32> to vector<8x128xf32>
    %57 = arith.addf %50, %56 : vector<8x128xf32>
    %c8_i32 = arith.constant 8 : i32
    %58 = arith.truncf %57 : vector<8x128xf32> to vector<8x128xbf16>
    %c0_7 = arith.constant 0 : index
    %c0_8 = arith.constant 0 : index
    %59 = vector.load %arg2[%c0_7, %c0_8] : memref<128x128xbf16, #tpu.memory_space<vmem>>, vector<128x128xbf16>
    %cst_9 = arith.constant dense<0.000000e+00> : vector<8x128xf32>
    %60 = tpu.matmul %58, %59, %cst_9 {dimension_numbers = #tpu.dot_dimension_numbers<[1], [0], [0], [1], [0, 0, 1, 1], [], []>} : vector<8x128xbf16>, vector<128x128xbf16>, vector<8x128xf32> -> vector<8x128xf32>
    %cst_10 = arith.constant 1.250000e-01 : f32
    %61 = vector.broadcast %cst_10 : f32 to vector<8x128xf32>
    %62 = arith.mulf %60, %61 : vector<8x128xf32>
    %63 = arith.truncf %62 : vector<8x128xf32> to vector<8x128xbf16>
    %c0_11 = arith.constant 0 : index
    %c0_12 = arith.constant 0 : index
    %64 = vector.load %arg3[%c0_11, %c0_12] : memref<128x128xbf16, #tpu.memory_space<vmem>>, vector<128x128xbf16>
    %cst_13 = arith.constant dense<0.000000e+00> : vector<8x128xf32>
    %65 = tpu.matmul %63, %64, %cst_13 {dimension_numbers = #tpu.dot_dimension_numbers<[1], [0], [0], [1], [0, 0, 1, 1], [], []>} : vector<8x128xbf16>, vector<128x128xbf16>, vector<8x128xf32> -> vector<8x128xf32>
    %c0_14 = arith.constant 0 : index
    %c0_15 = arith.constant 0 : index
    %66 = vector.load %arg4[%c0_14, %c0_15] : memref<1x128xf32, #tpu.memory_space<vmem>>, vector<1x128xf32>
    %67 = vector.broadcast %66 : vector<1x128xf32> to vector<8x128xf32>
    %68 = arith.addf %65, %67 : vector<8x128xf32>
    %cst_16 = arith.constant 0.000000e+00 : f32
    %69 = vector.broadcast %cst_16 : f32 to vector<8x128xf32>
    %70 = arith.maximumf %68, %69 : vector<8x128xf32>
    %71 = arith.truncf %70 : vector<8x128xf32> to vector<8x128xbf16>
    %c0_17 = arith.constant 0 : index
    %c0_18 = arith.constant 0 : index
    %72 = vector.load %arg5[%c0_17, %c0_18] : memref<128x128xbf16, #tpu.memory_space<vmem>>, vector<128x128xbf16>
    %cst_19 = arith.constant dense<0.000000e+00> : vector<8x128xf32>
    %73 = tpu.matmul %71, %72, %cst_19 {dimension_numbers = #tpu.dot_dimension_numbers<[1], [0], [0], [1], [0, 0, 1, 1], [], []>} : vector<8x128xbf16>, vector<128x128xbf16>, vector<8x128xf32> -> vector<8x128xf32>
    %c0_20 = arith.constant 0 : index
    %c0_21 = arith.constant 0 : index
    %74 = vector.load %arg6[%c0_20, %c0_21] : memref<1x128xf32, #tpu.memory_space<vmem>>, vector<1x128xf32>
    %75 = vector.broadcast %74 : vector<1x128xf32> to vector<8x128xf32>
    %76 = arith.addf %73, %75 : vector<8x128xf32>
    %77 = arith.mulf %76, %76 : vector<8x128xf32>
    %cst_22 = arith.constant dense<0.000000e+00> : vector<8xf32>
    %78 = vector.multi_reduction <add>, %77, %cst_22 [1] : vector<8x128xf32> to vector<8xf32>
    %79 = vector.shape_cast %78 : vector<8xf32> to vector<8x1xf32>
    %cst_23 = arith.constant 1.000000e-24 : f32
    %80 = vector.broadcast %cst_23 : f32 to vector<8x1xf32>
    %81 = arith.maximumf %79, %80 : vector<8x1xf32>
    %82 = math.rsqrt %81 : vector<8x1xf32>
    %83 = vector.broadcast %82 : vector<8x1xf32> to vector<8x128xf32>
    %84 = arith.mulf %76, %83 : vector<8x128xf32>
    %c0_24 = arith.constant 0 : index
    %c0_25 = arith.constant 0 : index
    %85 = vector.load %arg7[%c0_24, %c0_25] : memref<8x128xf32, #tpu.memory_space<vmem>>, vector<8x128xf32>
    tpu.vector_store %arg7[%c0_24, %c0_25], %84 {strides = array<i32>} : memref<8x128xf32, #tpu.memory_space<vmem>>, vector<8x128xf32>,
    return
  }
  func.func @transform_0(%arg0: i32) -> (i32, i32) {
    %c0_i32 = arith.constant 0 : i32
    %c0_i32_0 = arith.constant 0 : i32
    return %arg0, %c0_i32 : i32, i32
  }
  func.func @transform_1(%arg0: i32) -> (i32, i32) {
    %c0_i32 = arith.constant 0 : i32
    %c0_i32_0 = arith.constant 0 : i32
    %c0_i32_1 = arith.constant 0 : i32
    return %c0_i32, %c0_i32_0 : i32, i32
  }
  func.func @transform_2(%arg0: i32) -> (i32, i32) {
    %c0_i32 = arith.constant 0 : i32
    %c0_i32_0 = arith.constant 0 : i32
    %c0_i32_1 = arith.constant 0 : i32
    return %c0_i32, %c0_i32_0 : i32, i32
  }
  func.func @transform_3(%arg0: i32) -> (i32, i32) {
    %c0_i32 = arith.constant 0 : i32
    %c0_i32_0 = arith.constant 0 : i32
    %c0_i32_1 = arith.constant 0 : i32
    return %c0_i32, %c0_i32_0 : i32, i32
  }
  func.func @transform_4(%arg0: i32) -> (i32, i32) {
    %c0_i32 = arith.constant 0 : i32
    %c0_i32_0 = arith.constant 0 : i32
    %c0_i32_1 = arith.constant 0 : i32
    return %c0_i32, %c0_i32_0 : i32, i32
  }
  func.func @transform_5(%arg0: i32) -> (i32, i32) {
    %c0_i32 = arith.constant 0 : i32
    %c0_i32_0 = arith.constant 0 : i32
    %c0_i32_1 = arith.constant 0 : i32
    return %c0_i32, %c0_i32_0 : i32, i32
  }
  func.func @transform_6(%arg0: i32) -> (i32, i32) {
    %c0_i32 = arith.constant 0 : i32
    %c0_i32_0 = arith.constant 0 : i32
    return %arg0, %c0_i32 : i32, i32
  }
}

</mosaic_0001>

<bundles_post_ra>
// kernel: tpu_custom_call.1
= control target key start
LH: loop header
LB: loop body
LE: loop exit
PB: predicated region body
PF: predicated region fallthrough
CT: control target
= control target key end

     0   :  { %11 = vsyncpa [#allocation3], 0  ;;  %s1300_s0 = inlined_call_operand.vmem [shape: s32[24,8], index: 0, kind: input, shape index: {}]   ;;  %s1301_s1 = inlined_call_operand.hbm [shape: bf16[128,128], index: 1, kind: input, shape index: {}]   ;;  %s1302_s2 = inlined_call_operand.hbm [shape: bf16[128,128], index: 2, kind: input, shape index: {}]   ;;  %s1303_s3 = inlined_call_operand.vmem [shape: f32[1,128], index: 3, kind: input, shape index: {}]   ;;  %s1304_s4 = inlined_call_operand.hbm [shape: bf16[128,128], index: 4, kind: input, shape index: {}]   ;;  %s1305_s5 = inlined_call_operand.vmem [shape: f32[1,128], index: 5, kind: input, shape index: {}]   ;;  %s1306_s6 = inlined_call_operand.hbm [shape: f32[24,128], index: 6, kind: output, shape index: {}]  }
   0x1   :  { %12 = vsyncpa [#allocation6], 0 }
   0x2   :  { %13 = vsyncpa [#allocation4], 0 }
   0x3   :  { %15 = vsyncpa [#allocation4 + $0x1], 0  ;;  %s1171_s21 = smov 0   ;;  %s1173_s22 = smov 0  }
   0x4   :  { %s1175_s23 = smov 0   ;;  %s1177_s24 = smov 0  }
   0x5 LB: > { %s1192_s25 = sadd.s32 4294967295, %s1120_s24   ;;  %s722_s26 = sadd.s32 4294967294, %s1120_s24   ;;  %s1120_s24 = sphi %s1177_s24, %s1314_s24   ;;  %s1116_s23 = sphi %s1175_s23, %s1313_s23   ;;  %s1112_s22 = sphi %s1173_s22, %s1312_s22   ;;  %s1108_s21 = sphi %s1171_s21, %s1311_s21  }
   0x6   : > { %s1196_s27 = sadd.s32 1, %s1120_s24   ;;  %s159_s28 = sadd.s32 1, %s1116_s23 }
   0x7   : > { %s156_s29 = ssub.s32 %s1120_s24, %s1196_s27  ;;  %p169_p0 = scmp.ne.s32.totalorder %s1116_s23, %s1112_s22 }
   0x8   : > { %p157_p1 = scmp.eq.s32.totalorder %s156_s29, 0  ;;  %p170_p2 = scmp.eq.s32.totalorder %s1192_s25, 2 }
   0x9   : > { %p175_p3 = scmp.ne.s32.totalorder %s1112_s22, %s1108_s21  ;;  %p176_p4 = scmp.eq.s32.totalorder %s722_s26, 2 }
   0xa   : > { %s1207_s30 = scalar_select %p157_p1, %s1116_s23, %s159_s28  }
   0xb   : > { %p1209_p5 = por %p170_p2, %p169_p0  ;;  %p1213_p6 = por %p176_p4, %p175_p3 }
   0xc   : > { %p723_p7 = scmp.ge.s32.totalorder %s1120_s24, 1  ;;  %p183_p8 = scmp.lt.s32.totalorder %s1120_s24, 4 }
   0xd   : > { %p894_p9 = scmp.eq.s32.totalorder %s1192_s25, 0  ;;  %s208_s12 = sshll.u32 %s1302_s2, 4  ;;  %s209_s12 = int_to_ptr.hbm [resolvable:$true] %s208_s12 }
   0xe   : > { %p1220_p10 = pnand %p723_p7, %p183_p8  ;;  %s194_s15 = sshll.u32 %s1301_s1, 4  ;;  %s195_s15 = int_to_ptr.hbm [resolvable:$true] %s194_s15 }
   0xf   : > { %s1122_s17 = smov [#allocation5]   ;;  %s1123_s19 = smov 64  }
  0x10   : > { %p880_p11 = pneg %p1220_p10  ;;  %s210_s18 = sshll.u32 %s1122_s17, 4  ;;  %s211_s18 = int_to_ptr.vmem [resolvable:$true] %s210_s18 }
  0x11   : > { %s1124_s20 = smov 4   ;;  %s1125_s26 = smov [#allocation2]  }
  0x12   : > { %p1234_p12 = pnand %p894_p9, %p880_p11  ;;  %s196_s28 = sshll.u32 %s1125_s26, 4  ;;  %s197_s28 = int_to_ptr.vmem [resolvable:$true] %s196_s28 }
  0x13   : > { %s225_s11 = sshll.u32 %s1304_s4, 4  ;;  %s1126_s13 = smov [#allocation7]   ;;  %s226_s11 = int_to_ptr.hbm [resolvable:$true] %s225_s11 }
  0x14   : > { %886 = dma.hbm_to_vmem [thread:$0]  (!%p1234_p12), %s209_s12, 1024, %s211_s18, [#allocation6], %s1123_s19, %s1123_s19, %s1124_s20  }
  0x15   : > { %883 = dma.hbm_to_vmem [thread:$0]  (!%p1234_p12), %s195_s15, 1024, %s197_s28, [#allocation3], %s1123_s19, %s1123_s19, %s1124_s20  }
  0x16   : > { %s227_s14 = sshll.u32 %s1126_s13, 4  ;;  %253 = sbr.rel (%p1220_p10) target bundleno = 718 (0x2ce), region = 44  ;;  %s228_s14 = int_to_ptr.vmem [resolvable:$true] %s227_s14 }
  0x17   : > { %889 = dma.hbm_to_vmem [thread:$0]  (!%p1234_p12), %s226_s11, 1024, %s228_s14, [#allocation6], %s1123_s19, %s1123_s19, %s1124_s20  }
  0x1b   : > { %1095 = dma.done.wait (%p894_p9), [#allocation3], 1024  }
  0x1c   : > { %1097 = vsyncadd (%p894_p9), [#allocation3], 4294966272 }
  0x1d   : > { %1099 = dma.done.wait (%p894_p9), [#allocation6], 2048  }
  0x1e   : > { %1101 = vsyncadd (%p894_p9), [#allocation6], 4294965248  ;;  %p293_p13 = scmp.lt.s32.totalorder %s1192_s25, 2  ;;  %v1127_v0 = vmov 0   ;;  %v1128_v1 = vmov 2   ;;  %v1129_v2 = vmov 4   ;;  %v297_v20 = vlaneseq }
  0x1f   : > { %947 = vset.pattern.permute.xlu0 %v1127_v0  ;;  %949 = vset.pattern.permute.xlu1 %v1128_v1  ;;  %v849_v4 = vld [vmem:[#allocation2 + $0x38] sm:$0xff]  ;;  %v1130_v5 = vmov 1   ;;  %v1131_v6 = vmov 3   ;;  %v1132_v7 = vmov 5   ;;  %v1133_v8 = vmov 6   ;;  %v848_v10 = vld [vmem:[#allocation2 + $0x30] sm:$0xff] }
  0x20   : > { %s294_s9 = scalar_select %p293_p13, %s1192_s25, 2  ;;  %951 = vset.pattern.permute.xlu2 %v1129_v2  ;;  %421 = vmatpush.bf16.msra.mxu0 %v849_v4  ;;  %v1134_v9 = vmov 7   ;;  %v847_v11 = vld [vmem:[#allocation2 + $0x28] sm:$0xff]  ;;  %v846_v12 = vld [vmem:[#allocation2 + $0x20] sm:$0xff]  ;;  %v845_v13 = vld [vmem:[#allocation2 + $0x18] sm:$0xff]  ;;  %v298_v24 = vand.u32 127, %v297_v20 }
  0x21   : > { %v844_v14 = vld [vmem:[#allocation2 + $0x10] sm:$0xff]  ;;  %v843_v15 = vld [vmem:[#allocation2 + $0x8] sm:$0xff]  ;;  %v842_v16 = vld [vmem:[#allocation2] sm:$0xff]  ;;  %v1135_v30 = vmov 0.0   ;;  %s290_s28 = sand.u32 1, %s1112_s22   ;;  %s839_s10 = sshll.u32 %s1192_s25, 3 }
  0x22   : > { %s733_s12 = sshll.u32 %s294_s9, 3  ;;  %v857_v18 = vld [vmem:[#allocation5 + $0x38] sm:$0xff]  ;;  %v856_v19 = vld [vmem:[#allocation5 + $0x30] sm:$0xff]  ;;  %v855_v23 = vld [vmem:[#allocation5 + $0x28] sm:$0xff]  ;;  %s732_s29 = sshll.u32 %s290_s28, 3 }
  0x23   : > { %s296_s17 = scalar_lea.vmem %s1300_s0, %s733_s12  ;;  %504 = vmatpush.bf16.msra.mxu1 %v857_v18  ;;  %v854_v26 = vld [vmem:[#allocation5 + $0x20] sm:$0xff]  ;;  %v853_v29 = vld [vmem:[#allocation5 + $0x18] sm:$0xff]  ;;  %v852_v36 = vld [vmem:[#allocation5 + $0x10] sm:$0xff]  ;;  %s627_s14 = scalar_lea.hbm %s1306_s6, %s839_s10 }
  0x24   : > { %v299_v3 = vld [vmem:[%s296_s17] sm:$0xff]  ;;  %422 = vmatpush.bf16.msra.mxu0 %v848_v10  ;;  %v851_v43 = vld [vmem:[#allocation5 + $0x8] sm:$0xff]  ;;  %v865_v52 = vld [vmem:[#allocation7 + $0x38] sm:$0xff]  ;;  %s292_s9 = scalar_lea.vmem [#allocation8], %s732_s29  ;;  %s631_s15 = sshll.u32 %s627_s14, 4  ;;  %s632_s15 = int_to_ptr.hbm [resolvable:$true] %s631_s15 }
  0x25   : > { %301 = vperm.xlu0 %947, %v299_v3   ;;  %315 = vperm.xlu1 %949, %v299_v3   ;;  %v850_v51 = vld [vmem:[#allocation5] sm:$0xff]  ;;  %v864_v53 = vld [vmem:[#allocation7 + $0x30] sm:$0xff]  ;;  %v863_v54 = vld [vmem:[#allocation7 + $0x28] sm:$0xff]  ;;  %s629_s12 = sshll.u32 %s292_s9, 4  ;;  %s617_s25 = scalar_lea.sflag [#allocation4], %s290_s28  ;;  %s630_s12 = int_to_ptr.vmem [resolvable:$true] %s629_s12 }
  0x26   : > { %329 = vperm.xlu2 %951, %v299_v3   ;;  %587 = vmatpush.bf16.msra.mxu2 %v865_v52  ;;  %v862_v55 = vld [vmem:[#allocation7 + $0x20] sm:$0xff]  ;;  %v861_v56 = vld [vmem:[#allocation7 + $0x18] sm:$0xff]  ;;  %v860_v57 = vld [vmem:[#allocation7 + $0x10] sm:$0xff]  ;;  %s1064_s16 = sshra.s32 %s632_s15, 4  ;;  %s1070_s20 = scalar_lea.hbm %s1306_s6, 24  ;;  %s1065_s16 = int_to_ptr.hbm [resolvable:$true] %s1064_s16 }
  0x27   : > { %505 = vmatpush.bf16.msra.mxu1 %v856_v19  ;;  %v859_v62 = vld [vmem:[#allocation7 + $0x8] sm:$0xff]  ;;  %v858_v63 = vld [vmem:[#allocation7] sm:$0xff]  ;;  %s1066_s17 = scalar_lea.hbm %s1065_s16, 8  ;;  %p1071_p3 = scmp.lt.s32.totalorder %s1065_s16, %s1306_s6 }
  0x28   : > { %423 = vmatpush.bf16.msra.mxu0 %v847_v11  ;;  %v956_v0 = vld [vmem:[%s1303_s3] ss:$0 sm:$0xff]  ;;  %p1067_p0 = scmp.ne.s32.totalorder %s1065_s16, %s1066_s17  ;;  %p1072_p4 = scmp.lt.s32.totalorder %s1070_s20, %s1066_s17 }
  0x2a   : > { %588 = vmatpush.bf16.msra.mxu2 %v864_v53  ;;  %p1068_p1 = pnand %p1067_p0, %p1209_p5  ;;  %p1073_p7 = por %p1072_p4, %p1071_p3 }
  0x2b   : > { %506 = vmatpush.bf16.msra.mxu1 %v855_v23 }
  0x2c   : > { %424 = vmatpush.bf16.msra.mxu0 %v846_v12  ;;  %p1069_p2 = pneg %p1068_p1 }
  0x2d   : > { %948 = vset.pattern.permute.xlu0 %v1130_v5  ;;  %950 = vset.pattern.permute.xlu1 %v1131_v6  ;;  %v957_v6 = vld [vmem:[%s1305_s5] ss:$0 sm:$0xff] }
  0x2e   : > { %308 = vperm.xlu0 %948, %v299_v3   ;;  %322 = vperm.xlu1 %950, %v299_v3   ;;  %p1074_p8 = pnand %p1073_p7, %p1069_p2 }
  0x2f   : > { %952 = vset.pattern.permute.xlu2 %v1132_v7  ;;  %507 = vmatpush.bf16.msra.mxu1 %v854_v26 }
  0x30   : > { %336 = vperm.xlu2 %952, %v299_v3   ;;  %425 = vmatpush.bf16.msra.mxu0 %v845_v13 }
  0x31   : > { %589 = vmatpush.bf16.msra.mxu2 %v863_v54 }
  0x33   : > { %508 = vmatpush.bf16.msra.mxu1 %v853_v29 }
  0x34   : > { %426 = vmatpush.bf16.msra.mxu0 %v844_v14 }
  0x35   : > { %590 = vmatpush.bf16.msra.mxu2 %v862_v55 }
  0x36   : > { %953 = vset.pattern.permute.xlu1 %v1133_v8  ;;  %955 = vset.pattern.permute.xlu0 %v1134_v9 }
  0x37   : > { %343 = vperm.xlu1 %953, %v299_v3   ;;  %509 = vmatpush.bf16.msra.mxu1 %v852_v36 }
  0x38   : > { %954 = vset.pattern.permute.xlu2 %v1134_v9  ;;  %427 = vmatpush.bf16.msra.mxu0 %v843_v15 }
  0x39   : > { %350 = vperm.xlu2 %954, %v299_v3   ;;  %591 = vmatpush.bf16.msra.mxu2 %v861_v56 }
  0x3b   : > { %510 = vmatpush.bf16.msra.mxu1 %v851_v43 }
  0x3c   : > { %428 = vmatpush.bf16.msra.mxu0 %v842_v16 }
  0x3d   : > { %592 = vmatpush.bf16.msra.mxu2 %v860_v57 }
  0x3f   : > { %511 = vmatpush.bf16.msra.mxu1 %v850_v51 }
  0x41   : > { %593 = vmatpush.bf16.msra.mxu2 %v859_v62 }
  0x45   : > { %594 = vmatpush.bf16.msra.mxu2 %v858_v63 }
  0x80   : > { %v330_v17 = vpop.permute.xlu2 %329 }
  0x81   : > { %vm331_vm4 = vcmp.eq.s32.totalorder %v330_v17, %v298_v24 }
  0x82   : > { %v738_v40 = vsel %vm331_vm4, 1.0, %v1135_v30 }
  0x8a   : > { %v337_v25 = vpop.permute.xlu2 %336 }
  0x8b   : > { %vm338_vm5 = vcmp.eq.s32.totalorder %v337_v25, %v298_v24 }
  0x8c   : > { %v739_v44 = vsel %vm338_vm5, 1.0, %v1135_v30 }
  0x93   : > { %v351_v38 = vpop.permute.xlu2 %350 }
  0x94   : > { %vm352_vm6 = vcmp.eq.s32.totalorder %v351_v38, %v298_v24 }
  0x95   : > { %v741_v47 = vsel %vm352_vm6, 1.0, %v1135_v30 }
  0x97   : > { %v302_v21 = vpop.permute.xlu0 %301  ;;  %v316_v22 = vpop.permute.xlu1 %315 }
  0x98   : > { %vm303_vm0 = vcmp.eq.s32.totalorder %v302_v21, %v298_v24  ;;  %vm317_vm1 = vcmp.eq.s32.totalorder %v316_v22, %v298_v24 }
  0x99   : > { %v734_v31 = vsel %vm303_vm0, 1.0, %v1135_v30  ;;  %v736_v34 = vsel %vm317_vm1, 1.0, %v1135_v30 }
  0xa0   : > { %v309_v27 = vpop.permute.xlu0 %308  ;;  %v323_v28 = vpop.permute.xlu1 %322 }
  0xa1   : > { %vm310_vm2 = vcmp.eq.s32.totalorder %v309_v27, %v298_v24  ;;  %vm324_vm3 = vcmp.eq.s32.totalorder %v323_v28, %v298_v24 }
  0xa2   : > { %v735_v32 = vsel %vm310_vm2, 1.0, %v1135_v30  ;;  %v737_v37 = vsel %vm324_vm3, 1.0, %v1135_v30 }
  0xa3   : > { %v313_v33 = vadd.f32 %v735_v32, %v734_v31 }
  0xa5   : > { %v320_v35 = vadd.f32 %v736_v34, %v313_v33 }
  0xa7   : > { %v327_v39 = vadd.f32 %v737_v37, %v320_v35 }
  0xa9   : > { %v334_v41 = vadd.f32 %v738_v40, %v327_v39  ;;  %v344_v42 = vpop.permute.xlu1 %343 }
  0xaa   : > { %vm345_vm7 = vcmp.eq.s32.totalorder %v344_v42, %v298_v24 }
  0xab   : > { %v341_v45 = vadd.f32 %v739_v44, %v334_v41  ;;  %v740_v46 = vsel %vm345_vm7, 1.0, %v1135_v30 }
  0xad   : > { %v348_v48 = vadd.f32 %v740_v46, %v341_v45 }
  0xaf   : > { %v355_v49 = vadd.f32 %v741_v47, %v348_v48 }
  0xb1   : > { %v356_v50 = vpack.c.bf16 %v355_v49, %v355_v49 }
  0xb3   : > { %429 = vmatmul.bf16.vlgmr.msra.gmra.mxu0 %v356_v50 }
 0x130   : > { %v430_v58 = vpop.f32.mrf.mxu0 }
 0x131   : > { %v434_v59 = vmul.f32 0.125, %v430_v58 }
 0x133   : > { %v435_v60 = vpack.c.bf16 %v434_v59, %v434_v59 }
 0x135   : > { %512 = vmatmul.bf16.vlgmr.msra.gmra.mxu1 %v435_v60 }
 0x138   : > { %v432_v61 = vpop.f32.mrf.mxu0 }
 0x1b2   : > { %v513_v1 = vpop.f32.mrf.mxu1 }
 0x1b3   : > { %v514_v2 = vadd.f32 %v956_v0, %v513_v1 }
 0x1b5   : > { %v517_v3 = vmax.f32 %v514_v2, 0.0 }
 0x1b7   : > { %v518_v4 = vpack.c.bf16 %v517_v3, %v517_v3 }
 0x1b9   : > { %595 = vmatmul.bf16.vlgmr.msra.gmra.mxu2 %v518_v4 }
 0x1ba   : > { %v515_v5 = vpop.f32.mrf.mxu1 }
 0x23c   : > { %v596_v7 = vpop.f32.mrf.mxu2 }
 0x23d   : > { %v597_v8 = vadd.f32 %v957_v6, %v596_v7 }
 0x23f   : > { %v600_v9 = vmul.f32 %v597_v8, %v597_v8 }
 0x241   : > { %601 = vadd.xlane.f32.xlu0 %v600_v9 }
 0x244   : > { %v598_v10 = vpop.f32.mrf.mxu2 }
 0x2b4   : > { %v602_v11 = vpop.xlane.xlu0 %601 }
 0x2b5   : > { %v603_v12 = vmax.f32 %v602_v11, 1e-24 }
 0x2b7   : > { %958 = vrsqrt.f32 %v603_v12  ;;  %vm610_vm9 = vweird.f32 %v603_v12 }
 0x2bd   : > { %v959_v13 = vpop.eup %958 }
 0x2be   : > { %v605_v14 = vmul.f32 %v959_v13, %v603_v12  ;;  %vm611_vm8 = vweird.f32 %v959_v13 }
 0x2bf   : > { %vm612_vm10 = vmor %vm610_vm9, %vm611_vm8 }
 0x2c0   : > { %v606_v15 = vmul.f32 %v959_v13, %v605_v14 }
 0x2c2   : > { %v607_v16 = vmul.f32 0.5, %v606_v15 }
 0x2c4   : > { %v608_v17 = vsub.f32 1.5, %v607_v16 }
 0x2c6   : > { %v609_v18 = vmul.f32 %v959_v13, %v608_v17 }
 0x2c8   : > { %v613_v19 = vsel %vm612_vm10, %v959_v13, %v609_v18 }
 0x2c9   : > { %v614_v20 = vmul.f32 %v613_v19, %v597_v8 }
 0x2cb   : > { %615 = vst [vmem:[%s292_s9] sm:$0xff] %v614_v20 }
 0x2cc   : > { %1077 = shalt.err (!%p1074_p8)
}
 0x2cd   : > { %878 = dma.vmem_to_hbm [thread:$0]  (%p1209_p5), %s630_s12, 128, %s632_s15, %s617_s25  }
 0x2ce PF: > { %p900_p9 = scmp.ge.s32.totalorder %s1120_s24, 2  ;;  %s643_s28 = sand.u32 1, %s1108_s21  }
 0x2cf   : > { %s644_s10 = scalar_lea.sflag [#allocation4], %s643_s28 }
 0x2d0   : > { %p891_p10 = pnand %p900_p9, %p1213_p6 }
 0x2d2   : > { %p892_p11 = pneg %p891_p10 }
 0x2d4   : > { %1103 = dma.done.wait (%p892_p11), %s644_s10, 128  }
 0x2d5   : > { %1105 = vsyncadd (%p892_p11), %s644_s10, 4294967168  ;;  %p18_p12 = scmp.ge.s32.totalorder %s1196_s27, 5   ;;  %s1311_s21 = smov %s1112_s22 }
 0x2d6   : > { %s1312_s22 = smov %s1116_s23  ;;  %s1313_s23 = smov %s1207_s30 }
 0x2d7   : > { %s1314_s24 = smov %s1196_s27  ;;  %20 = sbr.rel (!%p18_p12) target bundleno = 5 (0x5), region = 92 }
 0x2dc   :  { %650 = vsyncpa [#allocation3], 1 }
 0x2dd   :  { %652 = vsyncpa [#allocation3 + $0x1], 1 }
 0x2de   :  { %653 = vsyncpa [#allocation6], 1 }
 0x2df   :  { %654 = vsyncpa [#allocation4], 1 }
 0x2e0   :  { %656 = vsyncpa [#allocation4 + $0x1], 1 }

</bundles_post_ra>
